<compile_context>
chip_gen: v6e
topology: v6e:2x2x1
jax: 0.10.0
libtpu: 0.0.40
codegen_flags: <defaults>
</compile_context>

<pallas_src>
import jax
import jax.numpy as jnp
from jax.experimental import pallas as pl
from jax.experimental.pallas import tpu as pltpu


def _copy_kernel(x_ref, o_ref):
    # Pure copy: input block is channel c+1, output block is channel c.
    o_ref[...] = x_ref[...]


# Cap per-block bytes: double-buffered input + output => ~4x this in VMEM,
# comfortably inside v7x's 32 MiB default scoped VMEM (and v5e/v6e's larger
# budgets).  A memcpy saturates HBM well before blocks need to be bigger.
_MAX_BLOCK_BYTES = 2 * 1024 * 1024


def s2m_rgb(x: jax.Array) -> jax.Array:
    """Drop the first channel of an NCHW tensor using a Pallas TPU kernel."""
    B, C, H, W = x.shape
    assert C >= 2, "S2M_RGB needs at least 2 channels"
    C_out = C - 1
    HW = H * W
    itemsize = jnp.dtype(x.dtype).itemsize

    if HW % 128 == 0:
        # Lane-dense fast path: view the spatial plane as (S, 128).
        S = HW // 128
        # Sublane tile: whole channel if it fits the byte cap, else a
        # multiple-of-32 tile (legal for f32 / bf16 / int8 sublane packing).
        max_s = max(32, (_MAX_BLOCK_BYTES // (128 * itemsize)) // 32 * 32)
        s_tile = S if S <= max_s else max_s
        n_s = pl.cdiv(S, s_tile)

        x4 = x.reshape(B, C, S, 128)
        out4 = pl.pallas_call(
            _copy_kernel,
            out_shape=jax.ShapeDtypeStruct((B, C_out, S, 128), x.dtype),
            grid=(B, C_out, n_s),
            in_specs=[
                # read input channel c+1 for output channel c
                pl.BlockSpec((1, 1, s_tile, 128),
                             lambda b, c, s: (b, c + 1, s, 0)),
            ],
            out_specs=pl.BlockSpec((1, 1, s_tile, 128),
                                   lambda b, c, s: (b, c, s, 0)),
            compiler_params=pltpu.CompilerParams(
                dimension_semantics=("parallel", "parallel", "parallel"),
            ),
        )(x4)
        return out4.reshape(B, C_out, H, W)

    # Fallback (H*W not a multiple of 128): copy full (H, W) slabs per
    # (batch, channel) step; full-dim blocks are always layout-legal.
    return pl.pallas_call(
        _copy_kernel,
        out_shape=jax.ShapeDtypeStruct((B, C_out, H, W), x.dtype),
        grid=(B, C_out),
        in_specs=[
            pl.BlockSpec((1, 1, H, W), lambda b, c: (b, c + 1, 0, 0)),
        ],
        out_specs=pl.BlockSpec((1, 1, H, W), lambda b, c: (b, c, 0, 0)),
        compiler_params=pltpu.CompilerParams(
            dimension_semantics=("parallel", "parallel"),
        ),
    )(x)


if __name__ == "__main__":
    key = jax.random.PRNGKey(0)
    B, C, H, W = 2, 4, 16, 16
    x = jax.random.normal(key, (B, C, H, W), dtype=jnp.float32)

    out = s2m_rgb(x)
    out = jax.block_until_ready(out)

    # Reference: plain JAX slice (same semantics as torch.unbind/stack[1:]).
    ref = x[:, 1:, :, :]
    assert out.shape == (B, C - 1, H, W), out.shape
    assert out.dtype == x.dtype
    assert jnp.array_equal(out, ref), "mismatch vs reference slice"

    print("KERNEL_OK")
</pallas_src>

<mosaic_0001>
module attributes {stable_mosaic.version = 11 : i64} {
  func.func @_copy_kernel(%arg0: i32, %arg1: i32, %arg2: i32, %arg3: memref<1x1x2x128xf32, #tpu.memory_space<vmem>>, %arg4: memref<1x1x2x128xf32, #tpu.memory_space<vmem>>) attributes {dimension_semantics = [#tpu.dimension_semantics<parallel>, #tpu.dimension_semantics<parallel>, #tpu.dimension_semantics<parallel>], iteration_bounds = array<i64: 2, 3, 1>, scalar_prefetch = 0 : i64, scratch_operands = 0 : i64, tpu.core_type = #tpu.core_type<tc>, window_params = [{transform_indices = @transform_0, window_bounds = array<i64: 1, 1, 2, 128>}, {transform_indices = @transform_1, window_bounds = array<i64: 1, 1, 2, 128>}]} {
    %c0 = arith.constant 0 : index
    %c0_0 = arith.constant 0 : index
    %c0_1 = arith.constant 0 : index
    %c0_2 = arith.constant 0 : index
    %0 = vector.load %arg3[%c0, %c0_0, %c0_1, %c0_2] : memref<1x1x2x128xf32, #tpu.memory_space<vmem>>, vector<1x1x2x128xf32>
    %c0_3 = arith.constant 0 : index
    %c0_4 = arith.constant 0 : index
    %c0_5 = arith.constant 0 : index
    %c0_6 = arith.constant 0 : index
    %1 = vector.load %arg4[%c0_3, %c0_4, %c0_5, %c0_6] : memref<1x1x2x128xf32, #tpu.memory_space<vmem>>, vector<1x1x2x128xf32>
    tpu.vector_store %arg4[%c0_3, %c0_4, %c0_5, %c0_6], %0 {strides = array<i32>} : memref<1x1x2x128xf32, #tpu.memory_space<vmem>>, vector<1x1x2x128xf32>,
    return
  }
  func.func @transform_0(%arg0: i32, %arg1: i32, %arg2: i32) -> (i32, i32, i32, i32) {
    %c1_i32 = arith.constant 1 : i32
    %0 = arith.addi %arg1, %c1_i32 : i32
    %c0_i32 = arith.constant 0 : i32
    %c0_i32_0 = arith.constant 0 : i32
    return %arg0, %0, %arg2, %c0_i32 : i32, i32, i32, i32
  }
  func.func @transform_1(%arg0: i32, %arg1: i32, %arg2: i32) -> (i32, i32, i32, i32) {
    %c0_i32 = arith.constant 0 : i32
    %c0_i32_0 = arith.constant 0 : i32
    return %arg0, %arg1, %arg2, %c0_i32 : i32, i32, i32, i32
  }
}

</mosaic_0001>

<bundles_post_ra>
// kernel: tpu_custom_call.1
= control target key start
LH: loop header
LB: loop body
LE: loop exit
PB: predicated region body
PF: predicated region fallthrough
CT: control target
= control target key end

     0   :  { %6 = vsyncpa [#allocation3], 0  ;;  %s746_s0 = inlined_call_operand.hbm [shape: f32[2,4,2,128], index: 0, kind: input, shape index: {}]   ;;  %s747_s1 = inlined_call_operand.hbm [shape: f32[2,3,2,128], index: 1, kind: output, shape index: {}]  }
   0x1   :  { %8 = vsyncpa [#allocation3 + $0x1], 0 }
   0x2   :  { %9 = vsyncpa [#allocation4], 0 }
   0x3   :  { %11 = vsyncpa [#allocation4 + $0x1], 0  ;;  %s556_s6 = smov 0   ;;  %s558_s7 = smov 0  }
   0x4   :  { %s560_s8 = smov 0   ;;  %s562_s9 = smov 0  }
   0x5   :  { %s564_s10 = smov 0   ;;  %s566_s11 = smov 0  }
   0x6   :  { %s568_s12 = smov 0   ;;  %s570_s13 = smov 0  }
   0x7   :  { %s572_s14 = smov 0   ;;  %s574_s15 = smov 0  }
   0x8   :  { %s576_s16 = smov 0  }
   0x9 LB: > { %s276_s17 = sadd.s32 4294967295, %s542_s16   ;;  %s277_s18 = sadd.s32 4294967294, %s542_s16   ;;  %s542_s16 = sphi %s576_s16, %s17_s16   ;;  %s538_s15 = sphi %s574_s15, %s769_s15   ;;  %s534_s14 = sphi %s572_s14, %s768_s14   ;;  %s530_s13 = sphi %s570_s13, %s767_s13   ;;  %s526_s12 = sphi %s568_s12, %s766_s12   ;;  %s522_s11 = sphi %s566_s11, %s765_s11   ;;  %s518_s10 = sphi %s564_s10, %s764_s10   ;;  %s514_s9 = sphi %s562_s9, %s763_s9   ;;  %s510_s8 = sphi %s560_s8, %s762_s8   ;;  %s506_s7 = sphi %s558_s7, %s761_s7   ;;  %s502_s6 = sphi %s556_s6, %s760_s6  }
   0xa   : > { %s32_s19 = sadd.s32 1, %s534_s14  ;;  %s36_s20 = sadd.s32 1, %s538_s15 }
   0xb   : > { %p34_p0 = scmp.ge.s32.totalorder %s32_s19, 3  ;;  %s49_s21 = sadd.s32 1, %s522_s11 }
   0xc   : > { %p56_p1 = scmp.ne.s32.totalorder %s522_s11, %s518_s10  ;;  %p57_p2 = scmp.eq.s32.totalorder %s542_s16, 0 }
   0xd   : > { %s617_s22 = scalar_select %p34_p0, 0, %s32_s19  }
   0xe   : > { %s771_s20 = smov (!%p34_p0, %s36_s20), %s538_s15  ;;  %p621_p3 = por %p57_p2, %p56_p1 }
   0xf   : > { %750 = sst [smem:[#allocation8_spill]] %s617_s22  ;;  %s41_s23 = sadd.s32 1, %s617_s22 }
  0x10   : > { %p38_p4 = scmp.ge.s32.totalorder %s771_s20, 2  ;;  %s43_s25 = ssub.s32 %s32_s19, %s41_s23 }
  0x11   : > { %p62_p5 = scmp.ne.s32.totalorder %s518_s10, %s514_s9  ;;  %p63_p6 = scmp.eq.s32.totalorder %s276_s17, 0 }
  0x12   : > { %s773_s20 = smov (%p38_p4, %s771_s20), 0  ;;  %s73_s27 = ssub.s32 %s534_s14, %s617_s22 }
  0x13   : > { %752 = sst [smem:[#allocation9_spill]] %s773_s20  ;;  %p628_p7 = por %p63_p6, %p62_p5 }
  0x14   : > { %s42_s28 = ssub.s32 %s538_s15, %s773_s20  ;;  %s79_s29 = sadd.s32 1, %s510_s8 }
  0x15   : > { %s44_s30 = sor.u32 %s43_s25, %s42_s28  ;;  %s74_s2 = sor.u32 %s73_s27, %s42_s28 }
  0x16   : > { %p47_p8 = scmp.eq.s32.totalorder %s44_s30, 0  ;;  %p77_p9 = scmp.eq.s32.totalorder %s74_s2, 0 }
  0x17   : > { %p89_p10 = scmp.ne.s32.totalorder %s510_s8, %s506_s7  ;;  %p90_p11 = scmp.eq.s32.totalorder %s276_s17, 5 }
  0x18   : > { %s640_s3 = scalar_select %p47_p8, %s522_s11, %s49_s21  }
  0x19   : > { %s643_s4 = scalar_select %p77_p9, %s510_s8, %s79_s29  }
  0x1a   : > { %p645_p12 = por %p90_p11, %p89_p10  ;;  %p95_p13 = scmp.ne.s32.totalorder %s506_s7, %s502_s6 }
  0x1b   : > { %p96_p0 = scmp.eq.s32.totalorder %s277_s18, 5  ;;  %p303_p1 = scmp.lt.s32.totalorder %s542_s16, 6 }
  0x1c   : > { %s116_s9 = sand.u32 1, %s522_s11   ;;  %s281_s21 = sshll.u32 %s538_s15, 2 }
  0x1d   : > { %p655_p2 = por %p96_p0, %p95_p13  ;;  %s280_s17 = sshll.u32 %s116_s9, 1 }
  0x1e   : > { %s214_s23 = sadd.s32 %s534_s14, %s281_s21  ;;  %s120_s27 = scalar_lea.vmem [#allocation2], %s280_s17 }
  0x1f   : > { %s755_s19 = scalar_select %p655_p2, 1, 0 }
  0x20   : > { %s282_s25 = sshll.u32 %s214_s23, 5  ;;  %s131_s28 = sshll.u32 %s120_s27, 4  ;;  %s132_s28 = int_to_ptr.vmem [resolvable:$true] %s131_s28 }
  0x21   : > { %s216_s2 = scalar_lea.hbm %s746_s0, %s282_s25  ;;  %p666_p4 = pnand %p303_p1, %p621_p3 }
  0x22   : > { %s217_s20 = scalar_lea.hbm %s216_s2, 32  ;;  %p283_p5 = scmp.ge.s32.totalorder %s542_s16, 1 }
  0x23   : > { %p136_p6 = scmp.lt.s32.totalorder %s542_s16, 7  ;;  %s117_s22 = scalar_lea.sflag [#allocation3], %s116_s9 }
  0x24   : > { %p395_p8 = pneg %p666_p4  ;;  %s406_s21 = scalar_lea.vmem %s132_s28, 32 }
  0x25   : > { %p407_p9 = scmp.ne.s32.totalorder %s132_s28, %s406_s21  ;;  %s544_s17 = smov [#allocation2]  }
  0x26   : > { %s411_s23 = sshll.u32 %s544_s17, 4  ;;  %s412_s23 = int_to_ptr.vmem [resolvable:$false] %s411_s23 }
  0x27   : > { %p409_p10 = pnand %p407_p9, %p395_p8  ;;  %s413_s25 = scalar_lea.vmem %s412_s23, 64 }
  0x28   : > { %p414_p13 = scmp.lt.s32.totalorder %s132_s28, %s412_s23  ;;  %p415_p0 = scmp.lt.s32.totalorder %s413_s25, %s406_s21 }
  0x29   : > { %p410_p11 = pneg %p409_p10 }
  0x2a   : > { %p416_p3 = por %p415_p0, %p414_p13 }
  0x2c   : > { %p417_p1 = pnand %p416_p3, %p410_p11 }
  0x2e   : > { %420 = shalt.err (!%p417_p1)
}
  0x2f   : > { %298 = dma.hbm_to_vmem [thread:$0]  (!%p666_p4), %s217_s20, 32, %s132_s28, %s117_s22  }
  0x30   : > { %p137_p2 = pnand %p283_p5, %p136_p6 }
  0x31   : > { %s142_s24 = sand.u32 (!%p137_p2), 1, %s518_s10  }
  0x32   : > { %140 = sbr.rel (%p137_p2) target bundleno = 82 (0x52), region = 24  ;;  %s284_s9 = sshll.u32 (!%p137_p2), %s142_s24, 1 }
  0x33   : > { %s143_s27 = scalar_lea.sflag (!%p137_p2), [#allocation3], %s142_s24  ;;  %s146_s29 = scalar_lea.vmem (!%p137_p2), [#allocation2], %s284_s9 }
  0x37   : > { %493 = dma.done.wait (%p628_p7), %s143_s27, 32  }
  0x38   : > { %495 = vsyncadd (%p628_p7), %s143_s27, 4294967264  ;;  %s162_s20 = sand.u32 1, %s506_s7   ;;  %s290_s22 = smul.u32 3, %s530_s13  ;;  %v166_v0 = vld [vmem:[%s146_s29] sm:$0x3] }
  0x39   : > { %s285_s28 = sshll.u32 %s162_s20, 1  ;;  %s169_s25 = scalar_lea.sflag [#allocation4], %s162_s20 }
  0x3a   : > { %s181_s30 = sadd.s32 %s526_s12, %s290_s22  ;;  %s164_s2 = scalar_lea.vmem [#allocation5], %s285_s28 }
  0x3b   : > { %s185_s18 = sshll.u32 %s164_s2, 4  ;;  %s287_s21 = sshll.u32 %s181_s30, 5  ;;  %167 = vst [vmem:[%s164_s2] sm:$0x3] %v166_v0  ;;  %s688_s18 = int_to_ptr.vmem [resolvable:$true] %s185_s18 }
  0x3c   : > { %s183_s26 = scalar_lea.hbm %s747_s1, %s287_s21  ;;  %s422_s24 = scalar_lea.vmem %s688_s18, 32 }
  0x3d   : > { %p423_p7 = scmp.ne.s32.totalorder %s688_s18, %s422_s24  ;;  %s545_s12 = smov [#allocation5]  }
  0x3e   : > { %s426_s13 = sshll.u32 %s545_s12, 4  ;;  %s427_s13 = int_to_ptr.vmem [resolvable:$false] %s426_s13 }
  0x3f   : > { %p424_p2 = pnand %p423_p7, %p645_p12  ;;  %s428_s9 = scalar_lea.vmem %s427_s13, 64 }
  0x40   : > { %p429_p5 = scmp.lt.s32.totalorder %s688_s18, %s427_s13  ;;  %p430_p6 = scmp.lt.s32.totalorder %s428_s9, %s422_s24 }
  0x41   : > { %p425_p4 = pneg %p424_p2 }
  0x42   : > { %p431_p8 = por %p430_p6, %p429_p5 }
  0x44   : > { %p432_p9 = pnand %p431_p8, %p425_p4 }
  0x46   : > { %435 = shalt.err (!%p432_p9)
}
  0x47   : > { %s436_s27 = scalar_lea.hbm %s183_s26, 32  ;;  %s440_s22 = scalar_lea.hbm %s747_s1, 192 }
  0x48   : > { %p437_p10 = scmp.ne.s32.totalorder %s183_s26, %s436_s27  ;;  %p441_p0 = scmp.lt.s32.totalorder %s183_s26, %s747_s1 }
  0x49   : > { %p442_p3 = scmp.lt.s32.totalorder %s440_s22, %s436_s27 }
  0x4a   : > { %p438_p11 = pnand %p437_p10, %p645_p12 }
  0x4b   : > { %p443_p1 = por %p442_p3, %p441_p0 }
  0x4c   : > { %p439_p13 = pneg %p438_p11 }
  0x4e   : > { %p444_p7 = pnand %p443_p1, %p439_p13 }
  0x50   : > { %447 = shalt.err (!%p444_p7)
}
  0x51   : > { %293 = dma.vmem_to_hbm [thread:$0]  (%p645_p12), %s688_s18, 32, %s183_s26, %s169_s25  }
  0x52 PF: > { %p304_p2 = scmp.ge.s32.totalorder %s542_s16, 2  ;;  %s197_s2 = sand.u32 1, %s502_s6  }
  0x53   : > { %p757_p4 = scmp.ne.s32.totalorder %s755_s19, 0  ;;  %s198_s21 = scalar_lea.sflag [#allocation4], %s197_s2 }
  0x55   : > { %p300_p5 = pnand %p304_p2, %p757_p4 }
  0x57   : > { %p301_p6 = pneg %p300_p5 }
  0x59   : > { %497 = dma.done.wait (%p301_p6), %s198_s21, 32  }
  0x5a   : > { %499 = vsyncadd (%p301_p6), %s198_s21, 4294967264  ;;  %s17_s16 = sadd.s32 1, %s542_s16   ;;  %s758_s5 = sld [smem:[#allocation8_spill]] }
  0x5b   : > { %p14_p8 = scmp.ge.s32.totalorder %s17_s16, 8   ;;  %s759_s18 = sld [smem:[#allocation9_spill]] }
  0x5c   : > { %s760_s6 = smov %s506_s7  ;;  %s761_s7 = smov %s510_s8 }
  0x5d   : > { %s762_s8 = smov %s643_s4  ;;  %s763_s9 = smov %s518_s10 }
  0x5e   : > { %s764_s10 = smov %s522_s11  ;;  %s765_s11 = smov %s640_s3 }
  0x5f   : > { %s766_s12 = smov %s534_s14  ;;  %s767_s13 = smov %s538_s15 }
  0x60   : > { %s768_s14 = smov %s758_s5  ;;  %16 = sbr.rel (!%p14_p8) target bundleno = 9 (0x9), region = 69 }
  0x61   : > { %s769_s15 = smov %s759_s18 }
  0x65   :  { %203 = vsyncpa [#allocation3], 1 }
  0x66   :  { %205 = vsyncpa [#allocation3 + $0x1], 1 }
  0x67   :  { %206 = vsyncpa [#allocation4], 1 }
  0x68   :  { %208 = vsyncpa [#allocation4 + $0x1], 1 }

</bundles_post_ra>
